<compile_context>
chip_gen: v5e
topology: v5e:2x2
jax: 0.10.0
libtpu: 0.0.40
codegen_flags: <defaults>
</compile_context>

<pallas_src>
import functools
import math

import jax
import jax.numpy as jnp
from jax import lax
from jax.experimental import pallas as pl
from jax.experimental.pallas import tpu as pltpu

# bf16 MXU inputs (v5e/v6e/v7x run the MXU at full rate only with bf16);
# accumulation stays f32.  Set to jnp.float32 to reproduce reference numerics.
MXU_DTYPE = jnp.bfloat16
# HBM dtype of kernel-to-kernel intermediates (projections, attention context).
INTERMEDIATE_DTYPE = jnp.bfloat16

# Scoped-VMEM budget.  32 MiB is safe on every generation we target; raise
# toward ~96 MiB on v5e/v6e (128 MiB physical) for bigger row tiles, keep
# <= ~56 MiB on v7x (64 MiB physical).
_VMEM_LIMIT_BYTES = 32 * 1024 * 1024


# ----------------------------------------------------------------------------
# Strided-roll capability probe (per-row shift = shift + row * stride)
# ----------------------------------------------------------------------------
@functools.lru_cache(maxsize=None)
def _strided_roll_supported() -> bool:
    """True iff pltpu.roll supports stride/stride_axis with jnp.roll semantics."""
    rows, lanes, base = 8, 128, 5

    def kern(x_ref, o_ref):
        o_ref[...] = pltpu.roll(x_ref[...], base, 1, stride=1, stride_axis=0)

    x = jnp.arange(rows * lanes, dtype=jnp.float32).reshape(rows, lanes)
    try:
        got = pl.pallas_call(
            kern, out_shape=jax.ShapeDtypeStruct((rows, lanes), jnp.float32)
        )(x)
        want = jnp.stack([jnp.roll(x[i], base + i) for i in range(rows)])
        return bool(jnp.array_equal(got, want))
    except Exception:  # lowering not supported on this backend -> use fallback
        return False


# ----------------------------------------------------------------------------
# Row-tiled dense (output projection) and fused K/V/Q projection kernels
# ----------------------------------------------------------------------------
def _dense_kernel(x_ref, w_ref, b_ref, o_ref):
    x = x_ref[...].astype(MXU_DTYPE)
    w = w_ref[...].astype(MXU_DTYPE)
    o_ref[...] = (
        jnp.dot(x, w, preferred_element_type=jnp.float32) + b_ref[...]
    ).astype(o_ref.dtype)


def dense(x, w, b, *, row_block=512, out_dtype=jnp.float32):
    """Row-tiled y = x @ w + b.  x: [N, in], w: [in, out], b: [out]."""
    n, in_dim = x.shape
    out_dim = w.shape[1]
    tr = n if n <= row_block else row_block
    return pl.pallas_call(
        _dense_kernel,
        out_shape=jax.ShapeDtypeStruct((n, out_dim), out_dtype),
        grid=(pl.cdiv(n, tr),),
        in_specs=[
            pl.BlockSpec((tr, in_dim), lambda i: (i, 0)),
            pl.BlockSpec((in_dim, out_dim), lambda i: (0, 0)),
            pl.BlockSpec((1, out_dim), lambda i: (0, 0)),
        ],
        out_specs=pl.BlockSpec((tr, out_dim), lambda i: (i, 0)),
        compiler_params=pltpu.CompilerParams(
            dimension_semantics=("parallel",),
            vmem_limit_bytes=_VMEM_LIMIT_BYTES,
        ),
    )(x, w, b.reshape(1, out_dim))


def _qkv_proj_kernel(kx_ref, vx_ref, qx_ref, wk_ref, wv_ref, wq_ref,
                     bk_ref, bv_ref, bq_ref, ko_ref, vo_ref, qo_ref):
    def proj(x_ref, w_ref, b_ref, o_ref):
        x = x_ref[...].astype(MXU_DTYPE)
        w = w_ref[...].astype(MXU_DTYPE)
        o_ref[...] = (
            jnp.dot(x, w, preferred_element_type=jnp.float32) + b_ref[...]
        ).astype(o_ref.dtype)

    proj(kx_ref, wk_ref, bk_ref, ko_ref)
    proj(vx_ref, wv_ref, bv_ref, vo_ref)
    proj(qx_ref, wq_ref, bq_ref, qo_ref)


def qkv_projection(kx, vx, qx, wk, wv, wq, bk, bv, bq, *, row_block=512):
    """Fused key/value/query projections in one row-tiled, pipelined call.

    Returns three [N, H*D] arrays in INTERMEDIATE_DTYPE (bf16).
    """
    n, in_dim = qx.shape
    hd = wq.shape[1]
    tr = n if n <= row_block else row_block
    x_spec = pl.BlockSpec((tr, in_dim), lambda i: (i, 0))
    w_spec = pl.BlockSpec((in_dim, hd), lambda i: (0, 0))
    b_spec = pl.BlockSpec((1, hd), lambda i: (0, 0))
    o_spec = pl.BlockSpec((tr, hd), lambda i: (i, 0))
    out_sh = jax.ShapeDtypeStruct((n, hd), INTERMEDIATE_DTYPE)
    return pl.pallas_call(
        _qkv_proj_kernel,
        out_shape=(out_sh, out_sh, out_sh),
        grid=(pl.cdiv(n, tr),),
        in_specs=[x_spec, x_spec, x_spec, w_spec, w_spec, w_spec,
                  b_spec, b_spec, b_spec],
        out_specs=(o_spec, o_spec, o_spec),
        compiler_params=pltpu.CompilerParams(
            dimension_semantics=("parallel",),
            vmem_limit_bytes=_VMEM_LIMIT_BYTES,
        ),
    )(kx, vx, qx, wk, wv, wq,
      bk.reshape(1, hd), bv.reshape(1, hd), bq.reshape(1, hd))


# ----------------------------------------------------------------------------
# Relative-position attention core (skew/roll based, all heads per grid step)
# ----------------------------------------------------------------------------
def _rel_attn_kernel(q_ref, k_ref, v_ref, tk_ref, tv_ref, ctx_ref, attn_ref,
                     *, head_count, dim_per_head, use_strided_roll):
    H, D = head_count, dim_per_head
    L = q_ref.shape[0]
    Wp = tk_ref.shape[0]                                  # padded relative width
    f32 = jnp.float32
    nt = (((1,), (1,)), ((), ()))                         # A @ B^T contraction

    def skew(x, base):
        # per-row roll: out[i, j] = x[i, (j - base - i) mod Wp]
        if use_strided_roll:
            return pltpu.roll(x, base % Wp, 1, stride=1, stride_axis=0)
        # fallback: uniform roll + log2(L) conditional uniform rolls (binary
        # decomposition of the per-row shift); guaranteed to lower.
        y = jnp.roll(x, base % Wp, axis=1)
        rows = lax.broadcasted_iota(jnp.int32, x.shape, 0)
        b = 1
        while b < L:
            y = jnp.where((rows & b) != 0, jnp.roll(y, b, axis=1), y)
            b *= 2
        return y

    # Head-independent constants, hoisted out of the head loop.
    r_i = lax.broadcasted_iota(jnp.int32, (L, L), 0)
    c_i = lax.broadcasted_iota(jnp.int32, (L, L), 1)
    flip = jnp.where(r_i + c_i == L - 1, 1.0, 0.0).astype(MXU_DTYPE)  # J [L, L]
    pad_zeros = jnp.zeros((L, Wp - L), f32)
    tk = tk_ref[...].astype(MXU_DTYPE)                    # [Wp, D]
    tv = tv_ref[...].astype(MXU_DTYPE)                    # [Wp, D]

    attn_acc = jnp.zeros((L, L), f32)
    ctx_flip_parts = []

    for h in range(H):
        cols = slice(h * D, (h + 1) * D)
        q = q_ref[:, cols].astype(MXU_DTYPE)              # [L, D] (pre-scaled)
        k = k_ref[:, cols].astype(MXU_DTYPE)
        v = v_ref[:, cols].astype(MXU_DTYPE)

        # logits: content (MXU) + relative keys via skewed table matmul:
        #   s_exp[i, m] = q[i] . rel_k[clip(L-m)]   (MXU, [L, Wp])
        #   s_rel[i, j] = s_exp[i, L + j - i]       (one XLU roll, band select)
        s_qk = lax.dot_general(q, k, nt, preferred_element_type=f32)
        s_exp = lax.dot_general(q, tk, nt, preferred_element_type=f32)
        s_rel = skew(s_exp, Wp - L)[:, :L]
        logits = s_qk + s_rel

        # softmax over keys (f32); reciprocal on the EUP slot
        m = jnp.max(logits, axis=-1, keepdims=True)
        e = jnp.exp(logits - m)
        inv_l = pl.reciprocal(jnp.sum(e, axis=-1, keepdims=True), approx=True)
        w = e * inv_l                                      # [L, L]
        attn_acc = attn_acc + w                            # fused head mean

        # value side, in the row-flipped frame so the adjoint skew is also a
        # +1-stride roll:  wf = J @ w;  wr = roll(wf|0);  c_rel_f = wr @ TVexp
        wf = jnp.dot(flip, w.astype(MXU_DTYPE), preferred_element_type=f32)
        wr = skew(jnp.concatenate([wf, pad_zeros], axis=1), 1)      # [L, Wp]
        ctx_f = jnp.dot(wf.astype(MXU_DTYPE), v, preferred_element_type=f32)
        ctx_f = ctx_f + jnp.dot(wr.astype(MXU_DTYPE), tv,
                                preferred_element_type=f32)         # [L, D]
        ctx_flip_parts.append(ctx_f)

    # un-flip once per batch step and store full-width (lane-dense)
    ctx_flip = jnp.concatenate(ctx_flip_parts, axis=1)              # [L, H*D]
    ctx = jnp.dot(flip, ctx_flip.astype(MXU_DTYPE),
                  preferred_element_type=f32)
    ctx_ref[...] = ctx.astype(ctx_ref.dtype)
    attn_ref[...] = (attn_acc * (1.0 / H)).astype(attn_ref.dtype)


def relative_attention_core(q, k, v, tk_exp, tv_exp, *, head_count,
                            dim_per_head, use_strided_roll):
    """q, k, v: [B, L, H*D] (query pre-scaled by 1/sqrt(D)); tables [Wp, D].

    Returns:
      context   [B, L, H*D]  combined-head layout (bf16), ready for final linear
      attn_mean [B, L, L]    mean over heads of the softmax weights (f32)
    """
    B, L, HD = q.shape
    Wp, D = tk_exp.shape
    kernel = functools.partial(
        _rel_attn_kernel,
        head_count=head_count,
        dim_per_head=dim_per_head,
        use_strided_roll=use_strided_roll,
    )
    qkv_spec = pl.BlockSpec((None, L, HD), lambda b: (b, 0, 0))
    tab_spec = pl.BlockSpec((Wp, D), lambda b: (0, 0))
    return pl.pallas_call(
        kernel,
        out_shape=(
            jax.ShapeDtypeStruct((B, L, HD), INTERMEDIATE_DTYPE),
            jax.ShapeDtypeStruct((B, L, L), jnp.float32),
        ),
        grid=(B,),
        in_specs=[qkv_spec, qkv_spec, qkv_spec, tab_spec, tab_spec],
        out_specs=(
            pl.BlockSpec((None, L, HD), lambda b: (b, 0, 0)),
            pl.BlockSpec((None, L, L), lambda b: (b, 0, 0)),
        ),
        compiler_params=pltpu.CompilerParams(
            dimension_semantics=("parallel",),
            vmem_limit_bytes=_VMEM_LIMIT_BYTES,
        ),
    )(q, k, v, tk_exp, tv_exp)


# ----------------------------------------------------------------------------
# Glue (plain JAX): parameter setup and forward pass
# ----------------------------------------------------------------------------
def init_params(key, model_dim, head_count, max_relative_position):
    dim_per_head = model_dim // head_count
    vocab = 2 * max_relative_position + 1
    ks = jax.random.split(key, 10)

    def lin(kw, kb, in_d, out_d):
        bound = 1.0 / math.sqrt(in_d)
        w = jax.random.uniform(kw, (in_d, out_d), jnp.float32, -bound, bound)
        b = jax.random.uniform(kb, (out_d,), jnp.float32, -bound, bound)
        return w, b

    w_k, b_k = lin(ks[0], ks[1], model_dim, head_count * dim_per_head)
    w_v, b_v = lin(ks[2], ks[3], model_dim, head_count * dim_per_head)
    w_q, b_q = lin(ks[4], ks[5], model_dim, head_count * dim_per_head)
    w_o, b_o = lin(ks[6], ks[7], head_count * dim_per_head, model_dim)

    # RelativePositionEmbeddings.reset_parameters: uniform(0, 1), row 0 zeroed.
    rel_k_table = jax.random.uniform(ks[8], (vocab, dim_per_head), jnp.float32)
    rel_k_table = rel_k_table.at[0].set(0.0)
    rel_v_table = jax.random.uniform(ks[9], (vocab, dim_per_head), jnp.float32)
    rel_v_table = rel_v_table.at[0].set(0.0)

    return dict(
        head_count=head_count,
        dim_per_head=dim_per_head,
        model_dim=model_dim,
        max_relative_position=max_relative_position,
        w_k=w_k, b_k=b_k, w_v=w_v, b_v=b_v, w_q=w_q, b_q=b_q, w_o=w_o, b_o=b_o,
        rel_k_table=rel_k_table, rel_v_table=rel_v_table,
    )


def mha_relative_forward(params, key, value, query):
    """Eval-mode forward of MultiHeadedAttentionRelative (mask=None, no caches).

    Self-attention shapes: key/value/query [B, L, model_dim] with equal L.
    """
    B, L, M = query.shape
    H = params["head_count"]
    D = params["dim_per_head"]
    P = params["max_relative_position"]
    HD = H * D
    assert L % 8 == 0, "sequence length must be a multiple of 8 (sublane tiling)"
    scale = 1.0 / math.sqrt(D)

    # Fused K/V/Q projections; 1/sqrt(D) query scale folded into w_q/b_q.
    k_p, v_p, q_p = qkv_projection(
        key.reshape(B * L, M), value.reshape(B * L, M), query.reshape(B * L, M),
        params["w_k"], params["w_v"], params["w_q"] * scale,
        params["b_k"], params["b_v"], params["b_q"] * scale)

    # Host-side table expansion over the un-clipped relative coordinate
    # m = j - i + L  (i = query idx, j = key idx), padded to a multiple of 128
    # so the in-kernel skew works on (8, 128)-aligned tiles.
    Wp = max(128, ((2 * L + 127) // 128) * 128)
    bucket = jnp.clip(L - jnp.arange(Wp), -P, P) + P
    tk_exp = params["rel_k_table"][bucket].astype(MXU_DTYPE)   # [Wp, D]
    tv_exp = params["rel_v_table"][bucket].astype(MXU_DTYPE)   # [Wp, D]

    ctx, top_attn = relative_attention_core(
        q_p.reshape(B, L, HD), k_p.reshape(B, L, HD), v_p.reshape(B, L, HD),
        tk_exp, tv_exp, head_count=H, dim_per_head=D,
        use_strided_roll=_strided_roll_supported())

    output = dense(ctx.reshape(B * L, HD), params["w_o"], params["b_o"])
    output = output.reshape(B, L, M)

    # Split-head key/value caches for the module's return contract [B, H, L, D].
    key_up = k_p.astype(jnp.float32).reshape(B, L, H, D).transpose(0, 2, 1, 3)
    value_up = v_p.astype(jnp.float32).reshape(B, L, H, D).transpose(0, 2, 1, 3)
    return output, top_attn, [key_up, value_up]


# ----------------------------------------------------------------------------
# Pure-JAX reference (mirrors the PyTorch module) for a loose numerics check
# ----------------------------------------------------------------------------
def _reference_forward(params, key, value, query):
    H = params["head_count"]
    D = params["dim_per_head"]
    P = params["max_relative_position"]
    B, L, M = query.shape

    def proj(x, w, b):
        y = x.reshape(B * L, M) @ w + b
        return y.reshape(B, L, H, D).transpose(0, 2, 1, 3)   # [B, H, L, D]

    k_up = proj(key, params["w_k"], params["b_k"])
    v_up = proj(value, params["w_v"], params["b_v"])
    q_up = proj(query, params["w_q"], params["b_q"]) / math.sqrt(D)

    idx = jnp.clip(jnp.arange(L)[:, None] - jnp.arange(L)[None, :], -P, P) + P
    ek = params["rel_k_table"][idx]                          # [L, L, D]
    ev = params["rel_v_table"][idx]

    logits = (jnp.einsum("bhid,bhjd->bhij", q_up, k_up)
              + jnp.einsum("bhid,ijd->bhij", q_up, ek))
    w = jax.nn.softmax(logits, axis=-1)
    ctx = (jnp.einsum("bhij,bhjd->bhid", w, v_up)
           + jnp.einsum("bhij,ijd->bhid", w, ev))
    ctx = ctx.transpose(0, 2, 1, 3).reshape(B, L, H * D)
    out = ctx @ params["w_o"] + params["b_o"]
    return out, w.mean(axis=1)


# ----------------------------------------------------------------------------
if __name__ == "__main__":
    B, L, MODEL_DIM, HEADS, MAX_REL = 2, 8, 32, 4, 4

    root = jax.random.PRNGKey(0)
    k_params, k_key, k_val, k_qry = jax.random.split(root, 4)
    params = init_params(k_params, MODEL_DIM, HEADS, MAX_REL)

    key_in = jax.random.normal(k_key, (B, L, MODEL_DIM), jnp.float32)
    value_in = jax.random.normal(k_val, (B, L, MODEL_DIM), jnp.float32)
    query_in = jax.random.normal(k_qry, (B, L, MODEL_DIM), jnp.float32)

    output, top_attn, cache = mha_relative_forward(params, key_in, value_in, query_in)
    jax.block_until_ready((output, top_attn, cache))

    assert output.shape == (B, L, MODEL_DIM)
    assert top_attn.shape == (B, L, L)
    assert cache[0].shape == (B, HEADS, L, MODEL_DIM // HEADS)
    assert cache[1].shape == (B, HEADS, L, MODEL_DIM // HEADS)

    # attention rows (mean over heads of per-head softmax) sum to ~1
    assert bool(jnp.allclose(jnp.sum(top_attn, axis=-1), 1.0, atol=1e-2))

    # loose comparison against a pure-JAX (f32) reference; tolerances account
    # for the bf16 MXU inputs / bf16 intermediates.
    ref_out, ref_attn = _reference_forward(params, key_in, value_in, query_in)
    attn_err = float(jnp.max(jnp.abs(top_attn - ref_attn)))
    out_err = float(jnp.max(jnp.abs(output - ref_out)))
    assert attn_err < 3e-2, f"attention mismatch: {attn_err}"
    assert out_err < 1e-1, f"output mismatch: {out_err}"

    print("KERNEL_OK")
</pallas_src>

<mosaic_0001>
module attributes {stable_mosaic.version = 11 : i64} {
  func.func @_qkv_proj_kernel(%arg0: i32, %arg1: memref<16x32xf32, #tpu.memory_space<vmem>>, %arg2: memref<16x32xf32, #tpu.memory_space<vmem>>, %arg3: memref<16x32xf32, #tpu.memory_space<vmem>>, %arg4: memref<32x32xf32, #tpu.memory_space<vmem>>, %arg5: memref<32x32xf32, #tpu.memory_space<vmem>>, %arg6: memref<32x32xf32, #tpu.memory_space<vmem>>, %arg7: memref<1x32xf32, #tpu.memory_space<vmem>>, %arg8: memref<1x32xf32, #tpu.memory_space<vmem>>, %arg9: memref<1x32xf32, #tpu.memory_space<vmem>>, %arg10: memref<16x32xbf16, #tpu.memory_space<vmem>>, %arg11: memref<16x32xbf16, #tpu.memory_space<vmem>>, %arg12: memref<16x32xbf16, #tpu.memory_space<vmem>>) attributes {dimension_semantics = [#tpu.dimension_semantics<parallel>], iteration_bounds = array<i64: 1>, scalar_prefetch = 0 : i64, scratch_operands = 0 : i64, tpu.core_type = #tpu.core_type<tc>, window_params = [{transform_indices = @transform_0, window_bounds = array<i64: 16, 32>}, {transform_indices = @transform_1, window_bounds = array<i64: 16, 32>}, {transform_indices = @transform_2, window_bounds = array<i64: 16, 32>}, {pipeline_mode = #tpu.pipeline_mode<synchronous>, transform_indices = @transform_3, window_bounds = array<i64: 32, 32>}, {pipeline_mode = #tpu.pipeline_mode<synchronous>, transform_indices = @transform_4, window_bounds = array<i64: 32, 32>}, {pipeline_mode = #tpu.pipeline_mode<synchronous>, transform_indices = @transform_5, window_bounds = array<i64: 32, 32>}, {pipeline_mode = #tpu.pipeline_mode<synchronous>, transform_indices = @transform_6, window_bounds = array<i64: 1, 32>}, {pipeline_mode = #tpu.pipeline_mode<synchronous>, transform_indices = @transform_7, window_bounds = array<i64: 1, 32>}, {pipeline_mode = #tpu.pipeline_mode<synchronous>, transform_indices = @transform_8, window_bounds = array<i64: 1, 32>}, {transform_indices = @transform_9, window_bounds = array<i64: 16, 32>}, {transform_indices = @transform_10, window_bounds = array<i64: 16, 32>}, {transform_indices = @transform_11, window_bounds = array<i64: 16, 32>}]} {
    %c0 = arith.constant 0 : index
    %c0_0 = arith.constant 0 : index
    %0 = vector.load %arg1[%c0, %c0_0] : memref<16x32xf32, #tpu.memory_space<vmem>>, vector<16x32xf32>
    %1 = arith.truncf %0 : vector<16x32xf32> to vector<16x32xbf16>
    %c0_1 = arith.constant 0 : index
    %c0_2 = arith.constant 0 : index
    %2 = vector.load %arg4[%c0_1, %c0_2] : memref<32x32xf32, #tpu.memory_space<vmem>>, vector<32x32xf32>
    %3 = arith.truncf %2 : vector<32x32xf32> to vector<32x32xbf16>
    %cst = arith.constant dense<0.000000e+00> : vector<16x32xf32>
    %4 = tpu.matmul %1, %3, %cst {dimension_numbers = #tpu.dot_dimension_numbers<[1], [0], [0], [1], [0, 0, 1, 1], [], []>} : vector<16x32xbf16>, vector<32x32xbf16>, vector<16x32xf32> -> vector<16x32xf32>
    %c0_3 = arith.constant 0 : index
    %c0_4 = arith.constant 0 : index
    %5 = vector.load %arg7[%c0_3, %c0_4] : memref<1x32xf32, #tpu.memory_space<vmem>>, vector<1x32xf32>
    %6 = vector.broadcast %5 : vector<1x32xf32> to vector<16x32xf32>
    %7 = arith.addf %4, %6 : vector<16x32xf32>
    %8 = arith.truncf %7 : vector<16x32xf32> to vector<16x32xbf16>
    %c0_5 = arith.constant 0 : index
    %c0_6 = arith.constant 0 : index
    %9 = vector.load %arg10[%c0_5, %c0_6] : memref<16x32xbf16, #tpu.memory_space<vmem>>, vector<16x32xbf16>
    tpu.vector_store %arg10[%c0_5, %c0_6], %8 {strides = array<i32>} : memref<16x32xbf16, #tpu.memory_space<vmem>>, vector<16x32xbf16>,
    %c0_7 = arith.constant 0 : index
    %c0_8 = arith.constant 0 : index
    %10 = vector.load %arg2[%c0_7, %c0_8] : memref<16x32xf32, #tpu.memory_space<vmem>>, vector<16x32xf32>
    %11 = arith.truncf %10 : vector<16x32xf32> to vector<16x32xbf16>
    %c0_9 = arith.constant 0 : index
    %c0_10 = arith.constant 0 : index
    %12 = vector.load %arg5[%c0_9, %c0_10] : memref<32x32xf32, #tpu.memory_space<vmem>>, vector<32x32xf32>
    %13 = arith.truncf %12 : vector<32x32xf32> to vector<32x32xbf16>
    %cst_11 = arith.constant dense<0.000000e+00> : vector<16x32xf32>
    %14 = tpu.matmul %11, %13, %cst_11 {dimension_numbers = #tpu.dot_dimension_numbers<[1], [0], [0], [1], [0, 0, 1, 1], [], []>} : vector<16x32xbf16>, vector<32x32xbf16>, vector<16x32xf32> -> vector<16x32xf32>
    %c0_12 = arith.constant 0 : index
    %c0_13 = arith.constant 0 : index
    %15 = vector.load %arg8[%c0_12, %c0_13] : memref<1x32xf32, #tpu.memory_space<vmem>>, vector<1x32xf32>
    %16 = vector.broadcast %15 : vector<1x32xf32> to vector<16x32xf32>
    %17 = arith.addf %14, %16 : vector<16x32xf32>
    %18 = arith.truncf %17 : vector<16x32xf32> to vector<16x32xbf16>
    %c0_14 = arith.constant 0 : index
    %c0_15 = arith.constant 0 : index
    %19 = vector.load %arg11[%c0_14, %c0_15] : memref<16x32xbf16, #tpu.memory_space<vmem>>, vector<16x32xbf16>
    tpu.vector_store %arg11[%c0_14, %c0_15], %18 {strides = array<i32>} : memref<16x32xbf16, #tpu.memory_space<vmem>>, vector<16x32xbf16>,
    %c0_16 = arith.constant 0 : index
    %c0_17 = arith.constant 0 : index
    %20 = vector.load %arg3[%c0_16, %c0_17] : memref<16x32xf32, #tpu.memory_space<vmem>>, vector<16x32xf32>
    %21 = arith.truncf %20 : vector<16x32xf32> to vector<16x32xbf16>
    %c0_18 = arith.constant 0 : index
    %c0_19 = arith.constant 0 : index
    %22 = vector.load %arg6[%c0_18, %c0_19] : memref<32x32xf32, #tpu.memory_space<vmem>>, vector<32x32xf32>
    %23 = arith.truncf %22 : vector<32x32xf32> to vector<32x32xbf16>
    %cst_20 = arith.constant dense<0.000000e+00> : vector<16x32xf32>
    %24 = tpu.matmul %21, %23, %cst_20 {dimension_numbers = #tpu.dot_dimension_numbers<[1], [0], [0], [1], [0, 0, 1, 1], [], []>} : vector<16x32xbf16>, vector<32x32xbf16>, vector<16x32xf32> -> vector<16x32xf32>
    %c0_21 = arith.constant 0 : index
    %c0_22 = arith.constant 0 : index
    %25 = vector.load %arg9[%c0_21, %c0_22] : memref<1x32xf32, #tpu.memory_space<vmem>>, vector<1x32xf32>
    %26 = vector.broadcast %25 : vector<1x32xf32> to vector<16x32xf32>
    %27 = arith.addf %24, %26 : vector<16x32xf32>
    %28 = arith.truncf %27 : vector<16x32xf32> to vector<16x32xbf16>
    %c0_23 = arith.constant 0 : index
    %c0_24 = arith.constant 0 : index
    %29 = vector.load %arg12[%c0_23, %c0_24] : memref<16x32xbf16, #tpu.memory_space<vmem>>, vector<16x32xbf16>
    tpu.vector_store %arg12[%c0_23, %c0_24], %28 {strides = array<i32>} : memref<16x32xbf16, #tpu.memory_space<vmem>>, vector<16x32xbf16>,
    return
  }
  func.func @transform_0(%arg0: i32) -> (i32, i32) {
    %c0_i32 = arith.constant 0 : i32
    %c0_i32_0 = arith.constant 0 : i32
    return %arg0, %c0_i32 : i32, i32
  }
  func.func @transform_1(%arg0: i32) -> (i32, i32) {
    %c0_i32 = arith.constant 0 : i32
    %c0_i32_0 = arith.constant 0 : i32
    return %arg0, %c0_i32 : i32, i32
  }
  func.func @transform_2(%arg0: i32) -> (i32, i32) {
    %c0_i32 = arith.constant 0 : i32
    %c0_i32_0 = arith.constant 0 : i32
    return %arg0, %c0_i32 : i32, i32
  }
  func.func @transform_3(%arg0: i32) -> (i32, i32) {
    %c0_i32 = arith.constant 0 : i32
    %c0_i32_0 = arith.constant 0 : i32
    %c0_i32_1 = arith.constant 0 : i32
    return %c0_i32, %c0_i32_0 : i32, i32
  }
  func.func @transform_4(%arg0: i32) -> (i32, i32) {
    %c0_i32 = arith.constant 0 : i32
    %c0_i32_0 = arith.constant 0 : i32
    %c0_i32_1 = arith.constant 0 : i32
    return %c0_i32, %c0_i32_0 : i32, i32
  }
  func.func @transform_5(%arg0: i32) -> (i32, i32) {
    %c0_i32 = arith.constant 0 : i32
    %c0_i32_0 = arith.constant 0 : i32
    %c0_i32_1 = arith.constant 0 : i32
    return %c0_i32, %c0_i32_0 : i32, i32
  }
  func.func @transform_6(%arg0: i32) -> (i32, i32) {
    %c0_i32 = arith.constant 0 : i32
    %c0_i32_0 = arith.constant 0 : i32
    %c0_i32_1 = arith.constant 0 : i32
    return %c0_i32, %c0_i32_0 : i32, i32
  }
  func.func @transform_7(%arg0: i32) -> (i32, i32) {
    %c0_i32 = arith.constant 0 : i32
    %c0_i32_0 = arith.constant 0 : i32
    %c0_i32_1 = arith.constant 0 : i32
    return %c0_i32, %c0_i32_0 : i32, i32
  }
  func.func @transform_8(%arg0: i32) -> (i32, i32) {
    %c0_i32 = arith.constant 0 : i32
    %c0_i32_0 = arith.constant 0 : i32
    %c0_i32_1 = arith.constant 0 : i32
    return %c0_i32, %c0_i32_0 : i32, i32
  }
  func.func @transform_9(%arg0: i32) -> (i32, i32) {
    %c0_i32 = arith.constant 0 : i32
    %c0_i32_0 = arith.constant 0 : i32
    return %arg0, %c0_i32 : i32, i32
  }
  func.func @transform_10(%arg0: i32) -> (i32, i32) {
    %c0_i32 = arith.constant 0 : i32
    %c0_i32_0 = arith.constant 0 : i32
    return %arg0, %c0_i32 : i32, i32
  }
  func.func @transform_11(%arg0: i32) -> (i32, i32) {
    %c0_i32 = arith.constant 0 : i32
    %c0_i32_0 = arith.constant 0 : i32
    return %arg0, %c0_i32 : i32, i32
  }
}

</mosaic_0001>

<bundles_post_ra>
// kernel: tpu_custom_call.1
= control target key start
LH: loop header
LB: loop body
LE: loop exit
PB: predicated region body
PF: predicated region fallthrough
CT: control target
= control target key end

     0   :  { %17 = vsyncpa [#allocation3], 0  ;;  %s676_s0 = inlined_call_operand.hbm [shape: f32[16,32], index: 0, kind: input, shape index: {}]   ;;  %s677_s1 = inlined_call_operand.hbm [shape: f32[16,32], index: 1, kind: input, shape index: {}]   ;;  %s678_s2 = inlined_call_operand.hbm [shape: f32[16,32], index: 2, kind: input, shape index: {}]   ;;  %s679_s3 = inlined_call_operand.hbm [shape: f32[32,32], index: 3, kind: input, shape index: {}]   ;;  %s680_s4 = inlined_call_operand.hbm [shape: f32[32,32], index: 4, kind: input, shape index: {}]   ;;  %s681_s5 = inlined_call_operand.hbm [shape: f32[32,32], index: 5, kind: input, shape index: {}]   ;;  %s682_s6 = inlined_call_operand.vmem [shape: f32[1,32], index: 6, kind: input, shape index: {}]   ;;  %s683_s7 = inlined_call_operand.vmem [shape: f32[1,32], index: 7, kind: input, shape index: {}]   ;;  %s684_s8 = inlined_call_operand.vmem [shape: f32[1,32], index: 8, kind: input, shape index: {}]   ;;  %s685_s9 = inlined_call_operand.hbm [shape: bf16[16,32], index: 9, kind: output, shape index: {0}]   ;;  %s686_s10 = inlined_call_operand.hbm [shape: bf16[16,32], index: 10, kind: output, shape index: {1}]   ;;  %s687_s11 = inlined_call_operand.hbm [shape: bf16[16,32], index: 11, kind: output, shape index: {2}]  }
   0x1   :  { %18 = vsyncpa [#allocation6], 0 }
   0x2   :  { %19 = vsyncpa [#allocation9], 0 }
   0x3   :  { %20 = vsyncpa [#allocation12], 0 }
   0x4   :  { %21 = vsyncpa [#allocation4], 0 }
   0x5   :  { %22 = vsyncpa [#allocation15], 0  ;;  %s40_s19 = sshll.u32 %s677_s1, 4  ;;  %s540_s20 = smov [#allocation5]   ;;  %s41_s19 = int_to_ptr.hbm [resolvable:$true] %s40_s19 }
   0x6   :  { %s42_s21 = sshll.u32 %s540_s20, 4  ;;  %s66_s24 = sshll.u32 %s679_s3, 4  ;;  %s43_s21 = int_to_ptr.vmem [resolvable:$true] %s42_s21  ;;  %s67_s24 = int_to_ptr.hbm [resolvable:$true] %s66_s24 }
   0x7   :  { %s541_s25 = smov 128   ;;  %s542_s26 = smov 8  }
   0x8   :  { %48 = dma.hbm_to_vmem [thread:$0]  %s41_s19, 256, %s43_s21, [#allocation6], %s541_s25, %s541_s25, %s542_s26  }
   0x9   :  { %s543_s27 = smov [#allocation8]   ;;  %s27_s1 = sshll.u32 %s676_s0, 4  ;;  %s28_s1 = int_to_ptr.hbm [resolvable:$true] %s27_s1 }
   0xa   :  { %s68_s28 = sshll.u32 %s543_s27, 4  ;;  %s53_s13 = sshll.u32 %s678_s2, 4  ;;  %s69_s28 = int_to_ptr.vmem [resolvable:$true] %s68_s28  ;;  %s54_s13 = int_to_ptr.hbm [resolvable:$true] %s53_s13 }
   0xb   :  { %74 = dma.hbm_to_vmem [thread:$0]  %s67_s24, 512, %s69_s28, [#allocation9], %s541_s25, %s541_s25, %s542_s26  }
   0xc   :  { %s544_s14 = smov [#allocation2]   ;;  %s545_s16 = smov [#allocation7]  }
   0xd   :  { %s29_s15 = sshll.u32 %s544_s14, 4  ;;  %s55_s0 = sshll.u32 %s545_s16, 4  ;;  %s30_s15 = int_to_ptr.vmem [resolvable:$true] %s29_s15  ;;  %s56_s0 = int_to_ptr.vmem [resolvable:$true] %s55_s0 }
   0xe   :  { %35 = dma.hbm_to_vmem [thread:$0]  %s28_s1, 256, %s30_s15, [#allocation3], %s541_s25, %s541_s25, %s542_s26  }
   0xf   :  { %s79_s19 = sshll.u32 %s680_s4, 4  ;;  %s92_s21 = sshll.u32 %s681_s5, 4  ;;  %s80_s19 = int_to_ptr.hbm [resolvable:$true] %s79_s19  ;;  %s93_s21 = int_to_ptr.hbm [resolvable:$true] %s92_s21 }
  0x10   :  { %61 = dma.hbm_to_vmem [thread:$0]  %s54_s13, 256, %s56_s0, [#allocation6], %s541_s25, %s541_s25, %s542_s26  }
  0x11   :  { %s546_s22 = smov [#allocation10]   ;;  %s547_s24 = smov [#allocation11]  }
  0x12   :  { %s81_s23 = sshll.u32 %s546_s22, 4  ;;  %s94_s4 = sshll.u32 %s547_s24, 4  ;;  %s82_s23 = int_to_ptr.vmem [resolvable:$true] %s81_s23  ;;  %s95_s4 = int_to_ptr.vmem [resolvable:$true] %s94_s4 }
  0x13   :  { %87 = dma.hbm_to_vmem [thread:$0]  %s80_s19, 512, %s82_s23, [#allocation9], %s541_s25, %s541_s25, %s542_s26  }
  0x14   :  { %100 = dma.hbm_to_vmem [thread:$0]  %s93_s21, 512, %s95_s4, [#allocation12], %s541_s25, %s541_s25, %s542_s26  }
  0x15   :  { %528 = dma.done.wait [#allocation3], 256  }
  0x16   :  { %529 = vsyncadd [#allocation3], 4294967040 }
  0x17   :  { %530 = dma.done.wait [#allocation6], 512  }
  0x18   :  { %531 = vsyncadd [#allocation6], 4294966784 }
  0x19   :  { %532 = dma.done.wait [#allocation9], 1024  }
  0x1a   :  { %533 = vsyncadd [#allocation9], 4294966272 }
  0x1b   :  { %534 = dma.done.wait [#allocation12], 512  }
  0x1c   :  { %535 = vsyncadd [#allocation12], 4294966784  ;;  %v137_v0 = vld [vmem:[#allocation8 + $0x10] sm:$0xff]  ;;  %v138_v1 = vld [vmem:[#allocation8 + $0x18] sm:$0xff]  ;;  %vm145_vm0 = vcmask 261120   ;;  %vm165_vm1 = vcmask 257024  }
  0x1d   :  { %v173_v2 = vld [vmem:[#allocation10 + $0x10] sm:$0xff]  ;;  %v140_v3 = vpack.c.bf16 %v138_v1, %v137_v0  ;;  %v174_v4 = vld [vmem:[#allocation10 + $0x18] sm:$0xff]  ;;  %v135_v9 = vld [vmem:[#allocation8] sm:$0xff]  ;;  %s242_s13 = sshll.u32 %s685_s9, 4  ;;  %s255_s15 = sshll.u32 %s686_s10, 4  ;;  %s243_s13 = int_to_ptr.hbm [resolvable:$true] %s242_s13  ;;  %s256_s15 = int_to_ptr.hbm [resolvable:$true] %s255_s15 }
  0x1e   :  { %v207_v5 = vld [vmem:[#allocation11 + $0x10] sm:$0xff]  ;;  %v208_v6 = vld [vmem:[#allocation11 + $0x18] sm:$0xff]  ;;  %v176_v7 = vpack.c.bf16 %v174_v4, %v173_v2  ;;  %v136_v10 = vld [vmem:[#allocation8 + $0x8] sm:$0xff]  ;;  %s550_s16 = smov [#allocation16]   ;;  %s268_s18 = sshll.u32 %s687_s11, 4  ;;  %s269_s18 = int_to_ptr.hbm [resolvable:$true] %s268_s18 }
  0x1f   :  { %v210_v8 = vpack.c.bf16 %v208_v6, %v207_v5  ;;  %v171_v11 = vld [vmem:[#allocation10] sm:$0xff]  ;;  %155 = vmatpush.bf16.msra.mxu0 %v140_v3  ;;  %v139_v12 = vpack.c.bf16 %v136_v10, %v135_v9  ;;  %v172_v13 = vld [vmem:[#allocation10 + $0x8] sm:$0xff]  ;;  %v132_v18 = vld [vmem:[#allocation2] sm:$0xff]  ;;  %s266_s9 = sshll.u32 %s550_s16, 4  ;;  %s551_s10 = smov 64   ;;  %s267_s9 = int_to_ptr.vmem [resolvable:$true] %s266_s9 }
  0x20   :  { %v205_v14 = vld [vmem:[#allocation11] sm:$0xff]  ;;  %v206_v15 = vld [vmem:[#allocation11 + $0x8] sm:$0xff]  ;;  %190 = vmatpush.bf16.msra.mxu1 %v176_v7  ;;  %v175_v16 = vpack.c.bf16 %v172_v13, %v171_v11  ;;  %v133_v19 = vld [vmem:[#allocation2 + $0x8] sm:$0xff]  ;;  %s552_s19 = smov 4  }
  0x21   :  { %224 = vmatpush.bf16.msra.mxu2 %v210_v8  ;;  %v209_v17 = vpack.c.bf16 %v206_v15, %v205_v14  ;;  %v168_v20 = vld [vmem:[#allocation5] sm:$0xff]  ;;  %v169_v21 = vld [vmem:[#allocation5 + $0x8] sm:$0xff]  ;;  %v202_v22 = vld [vmem:[#allocation7] sm:$0xff]  ;;  %v134_v24 = vpack.c.bf16 %v133_v19, %v132_v18 }
  0x22   :  { %v203_v23 = vld [vmem:[#allocation7 + $0x8] sm:$0xff]  ;;  %v170_v25 = vpack.c.bf16 %v169_v21, %v168_v20  ;;  %v309_v27 = vld [vmem:[%s682_s6] ss:$0 sm:$0xff]  ;;  %s548_s6 = smov [#allocation14]  }
  0x23   :  { %156 = vmatpush.bf16.msra.mxu0 %v139_v12  ;;  %v204_v26 = vpack.c.bf16 %v203_v23, %v202_v22  ;;  %v310_v28 = vld [vmem:[%s683_s7] ss:$0 sm:$0xff]  ;;  %s660_s30 = sshll.u32 %s548_s6, 4  ;;  %s549_s7 = smov [#allocation13]   ;;  %s254_s30 = int_to_ptr.vmem [resolvable:$true] %s660_s30 }
  0x24   :  { %191 = vmatpush.bf16.msra.mxu1 %v175_v16  ;;  %v311_v35 = vld [vmem:[%s684_s8] ss:$0 sm:$0xff]  ;;  %s240_s1 = sshll.u32 %s549_s7, 4  ;;  %s241_s1 = int_to_ptr.vmem [resolvable:$true] %s240_s1 }
  0x25   :  { %225 = vmatpush.bf16.msra.mxu2 %v209_v17 }
  0x26   :  { %293 = vmatmul.msk.bf16.vlgmr.msra.gmra.mxu0 %vm145_vm0, %v134_v24 }
  0x27   :  { %294 = vmatmul.msk.bf16.vlgmr.msra.gmra.mxu1 %vm145_vm0, %v170_v25 }
  0x28   :  { %295 = vmatmul.msk.bf16.vlgmr.msra.gmra.mxu2 %vm145_vm0, %v204_v26 }
  0xa3   :  { %v158_v29 = vpop.f32.mrf.mxu0 }
  0xa4   :  { %v159_v30 = vadd.f32 %v309_v27, %v158_v29  ;;  %v193_v31 = vpop.f32.mrf.mxu1 }
  0xa5   :  { %v194_v32 = vadd.f32 %v310_v28, %v193_v31 }
  0xa6   :  { %v163_v33 = vpack.c.bf16 %v159_v30, %v159_v30 }
  0xa7   :  { %v198_v34 = vpack.c.bf16 %v194_v32, %v194_v32 }
  0xa8   :  { %166 = vst.msk [vmem:[#allocation13] sm:$0xf] %vm165_vm1, %v163_v33 }
  0xa9   :  { %200 = vst.msk [vmem:[#allocation14] sm:$0xf] %vm165_vm1, %v198_v34 }
  0xab   :  { %v227_v36 = vpop.f32.mrf.mxu2  ;;  %v160_v38 = vpop.f32.mrf.mxu0 }
  0xac   :  { %v228_v37 = vadd.f32 %v311_v35, %v227_v36  ;;  %v161_v39 = vadd.f32 %v309_v27, %v160_v38  ;;  %v195_v40 = vpop.f32.mrf.mxu1 }
  0xad   :  { %v196_v42 = vadd.f32 %v310_v28, %v195_v40 }
  0xae   :  { %v232_v41 = vpack.c.bf16 %v228_v37, %v228_v37  ;;  %v164_v43 = vpack.c.bf16 %v161_v39, %v161_v39 }
  0xaf   :  { %v199_v44 = vpack.c.bf16 %v196_v42, %v196_v42 }
  0xb0   :  { %234 = vst.msk [vmem:[#allocation16] sm:$0xf] %vm165_vm1, %v232_v41 }
  0xb1   :  { %167 = vst.msk [vmem:[#allocation13 + $0x4] sm:$0xf] %vm165_vm1, %v164_v43 }
  0xb2   :  { %201 = vst.msk [vmem:[#allocation14 + $0x4] sm:$0xf] %vm165_vm1, %v199_v44  ;;  %248 = dma.vmem_to_hbm [thread:$0]  %s241_s1, 128, %s243_s13, [#allocation4], %s551_s10, %s551_s10, %s552_s19  }
  0xb3   :  { %v229_v45 = vpop.f32.mrf.mxu2  ;;  %261 = dma.vmem_to_hbm [thread:$0]  %s254_s30, 128, %s256_s15, [#allocation15], %s551_s10, %s551_s10, %s552_s19  }
  0xb4   :  { %v230_v46 = vadd.f32 %v311_v35, %v229_v45 }
  0xb6   :  { %v233_v47 = vpack.c.bf16 %v230_v46, %v230_v46 }
  0xb8   :  { %235 = vst.msk [vmem:[#allocation16 + $0x4] sm:$0xf] %vm165_vm1, %v233_v47 }
  0xb9   :  { %274 = dma.vmem_to_hbm [thread:$0]  %s267_s9, 128, %s269_s18, [#allocation15], %s551_s10, %s551_s10, %s552_s19  }
  0xba   :  { %536 = dma.done.wait [#allocation4], 128  }
  0xbb   :  { %537 = vsyncadd [#allocation4], 4294967168 }
  0xbc   :  { %538 = dma.done.wait [#allocation15], 256  }
  0xbd   :  { %539 = vsyncadd [#allocation15], 4294967040 }
  0xbe   :  { %287 = vsyncpa [#allocation3], 1 }
  0xbf   :  { %288 = vsyncpa [#allocation6], 1 }
  0xc0   :  { %289 = vsyncpa [#allocation9], 1 }
  0xc1   :  { %290 = vsyncpa [#allocation12], 1 }
  0xc2   :  { %291 = vsyncpa [#allocation4], 1 }
  0xc3   :  { %292 = vsyncpa [#allocation15], 1 }

</bundles_post_ra>
